<compile_context>
chip_gen: v5e
topology: v5e:2x2
jax: 0.10.0
libtpu: 0.0.40
codegen_flags: <defaults>
</compile_context>

<pallas_src>
import jax
import jax.numpy as jnp
from jax import lax
from jax.experimental import pallas as pl
from jax.experimental.pallas import tpu as pltpu


def _round_up(x, m):
    return ((x + m - 1) // m) * m


# ---------------------------------------------------------------------------
# Pallas kernel: one batch tile of the 3-layer MLP.
# ---------------------------------------------------------------------------
def reward_mlp_kernel(state_ref, action_ref, w1s_ref, w1a_ref, b1_ref,
                      w2_ref, b2_ref, w3_ref, b3_ref, out_ref):
    # ---- layer 1: fused concat == row-split W1; bf16 MXU, fp32 accumulate.
    s = state_ref[...].astype(jnp.bfloat16)             # (TB, obs)
    a = action_ref[...].astype(jnp.bfloat16)            # (TB, act)
    h1 = jnp.dot(s, w1s_ref[...], preferred_element_type=jnp.float32)
    h1 = h1 + jnp.dot(a, w1a_ref[...], preferred_element_type=jnp.float32)
    h1 = jnp.maximum(h1 + b1_ref[...], 0.0)             # (TB, H) fp32, VPU

    # ---- layer 2
    h2 = jnp.dot(h1.astype(jnp.bfloat16), w2_ref[...],
                 preferred_element_type=jnp.float32)
    h2 = jnp.maximum(h2 + b2_ref[...], 0.0)             # (TB, H) fp32

    # ---- layer 3: contract on H with an NT dot_general -> lane-dense (1, TB)
    # row; no (TB, H) fp32 transpose is materialized per tile.
    r = lax.dot_general(w3_ref[...], h2, (((1,), (1,)), ((), ())),
                        preferred_element_type=jnp.float32)
    out_ref[...] = (r + b3_ref[0, 0]).astype(out_ref.dtype)


# ---------------------------------------------------------------------------
# One-time weight prep (hoisted out of the per-call forward): split W1 so the
# concat never materializes, cast the hidden-layer weights to bf16 once, and
# lay w3 out as a (1, H) row for the lane-dense head.
# ---------------------------------------------------------------------------
def prepare_params(params, obs_dim):
    w1, b1, w2, b2, w3, b3 = params
    hidden = w1.shape[1]
    return (
        w1[:obs_dim].astype(jnp.bfloat16),                  # (obs, H)
        w1[obs_dim:].astype(jnp.bfloat16),                  # (act, H)
        jnp.asarray(b1, jnp.float32).reshape(1, hidden),    # b1
        w2.astype(jnp.bfloat16),                            # (H, H)
        jnp.asarray(b2, jnp.float32).reshape(1, hidden),    # b2
        jnp.asarray(w3, jnp.float32).reshape(1, hidden),    # w3 row (1, H)
        jnp.asarray(b3, jnp.float32).reshape(1, 1),         # b3 scalar
    )


# ---------------------------------------------------------------------------
# Wrapper: batch tiling; glue reshapes only (no pad, no per-call casts).
# ---------------------------------------------------------------------------
def reward_net_forward(state, action, prepared, *, block_rows=2048):
    """reward_net.forward(state, action) -> (B, 1) rewards.

    `prepared` comes from prepare_params().  state/action may be fp32 or bf16
    (bf16 halves the dominant HBM input traffic); the MXU cast is in-kernel.
    For tiny batches the fixed pallas_call launch cost dominates -- batch many
    reward evaluations into one call.
    """
    w1s, w1a, b1, w2, b2, w3_row, b3 = prepared
    B, obs_dim = state.shape
    act_dim = action.shape[1]
    hidden = w2.shape[0]
    assert w1s.shape == (obs_dim, hidden) and w1a.shape == (act_dim, hidden)
    assert block_rows % 128 == 0

    # Batch tile: a multiple of 128 (lane-dense output row), capped at
    # ceil(B/2) so there are >= 2 grid steps whenever B allows it (keeps both
    # v7x TensorCores busy), and capped at block_rows.  A 2048-row fp32 tile
    # plus its fp32 activations is < 1 MB double-buffered -- far inside even
    # v5e's 16 MiB scoped-VMEM default, so no vmem_limit_bytes override needed.
    TB = max(128, min(block_rows, _round_up(-(-B // 2), 128)))
    n_tiles = -(-B // TB)   # ragged last tile handled by Pallas (no jnp.pad)

    in_bytes = (int(state.size) * state.dtype.itemsize
                + int(action.size) * action.dtype.itemsize)
    w_bytes = sum(int(x.size) * x.dtype.itemsize
                  for x in (w1s, w1a, b1, w2, b2, w3_row, b3))
    cost = pl.CostEstimate(
        flops=2 * B * ((obs_dim + act_dim) * hidden + hidden * hidden + hidden),
        transcendentals=0,
        bytes_accessed=in_bytes + w_bytes + B * 4)

    out = pl.pallas_call(
        reward_mlp_kernel,
        out_shape=jax.ShapeDtypeStruct((1, B), jnp.float32),
        grid_spec=pl.GridSpec(
            grid=(n_tiles,),
            in_specs=[
                pl.BlockSpec((TB, obs_dim), lambda i: (i, 0)),       # state
                pl.BlockSpec((TB, act_dim), lambda i: (i, 0)),       # action
                # Constant index_maps -> weights stay resident in VMEM across
                # the whole grid.  (For production-sized hidden dims on v7x,
                # add pipeline_mode=pl.Buffered(1) here to single-buffer the
                # resident operands; at H=32 it changes nothing.)
                pl.BlockSpec((obs_dim, hidden), lambda i: (0, 0)),   # W1[:obs]
                pl.BlockSpec((act_dim, hidden), lambda i: (0, 0)),   # W1[obs:]
                pl.BlockSpec((1, hidden), lambda i: (0, 0)),         # b1
                pl.BlockSpec((hidden, hidden), lambda i: (0, 0)),    # W2
                pl.BlockSpec((1, hidden), lambda i: (0, 0)),         # b2
                pl.BlockSpec((1, hidden), lambda i: (0, 0)),         # w3 row
                pl.BlockSpec(memory_space=pltpu.MemorySpace.SMEM),   # b3
            ],
            out_specs=pl.BlockSpec((1, TB), lambda i: (0, i)),
        ),
        compiler_params=pltpu.CompilerParams(
            dimension_semantics=("parallel",)),
        cost_estimate=cost,
    )(state, action, w1s, w1a, b1, w2, b2, w3_row, b3)

    return out.reshape(B, 1)                               # (B, 1)


# ---------------------------------------------------------------------------
# Deterministic parameter init mirroring weight_init:
#   Linear weights -> orthogonal, biases -> 0.  Stored [in, out].
# ---------------------------------------------------------------------------
def init_params(key, in_dim, hidden_dim):
    k1, k2, k3 = jax.random.split(key, 3)
    ortho = jax.nn.initializers.orthogonal()
    w1 = ortho(k1, (in_dim, hidden_dim), jnp.float32)
    b1 = jnp.zeros((1, hidden_dim), jnp.float32)
    w2 = ortho(k2, (hidden_dim, hidden_dim), jnp.float32)
    b2 = jnp.zeros((1, hidden_dim), jnp.float32)
    w3 = ortho(k3, (hidden_dim, 1), jnp.float32)
    b3 = jnp.zeros((1, 1), jnp.float32)
    return (w1, b1, w2, b2, w3, b3)


if __name__ == "__main__":
    # Small shapes implied by the module: flat obs + flat action, hidden MLP.
    # B=300 -> TB=256, two batch tiles: exercises the ragged (unpadded) last
    # tile and the >=2-tile split.
    B, OBS_DIM, ACT_DIM, HIDDEN = 300, 16, 8, 32

    key = jax.random.PRNGKey(0)
    k_state, k_action, k_params = jax.random.split(key, 3)

    state = jax.random.normal(k_state, (B, OBS_DIM), jnp.float32)
    action = jax.random.normal(k_action, (B, ACT_DIM), jnp.float32)
    params = init_params(k_params, OBS_DIM + ACT_DIM, HIDDEN)
    prepared = prepare_params(params, OBS_DIM)     # hoisted one-time prep

    out = reward_net_forward(state, action, prepared)
    out = jax.block_until_ready(out)

    # Pure-JAX reference using the same bf16-input / fp32-accumulate scheme.
    # (The kernel accumulates layer 1 as two fp32 partial sums -- split W1 --
    #  which differs from the fused reference matmul only in rounding.)
    w1, b1, w2, b2, w3, b3 = params
    sa = jnp.concatenate([state, action], axis=1).astype(jnp.bfloat16)
    h1 = jnp.maximum(jnp.dot(sa, w1.astype(jnp.bfloat16),
                             preferred_element_type=jnp.float32) + b1, 0.0)
    h2 = jnp.maximum(jnp.dot(h1.astype(jnp.bfloat16), w2.astype(jnp.bfloat16),
                             preferred_element_type=jnp.float32) + b2, 0.0)
    ref = jnp.dot(h2, w3) + b3                             # (B, 1) fp32

    assert out.shape == (B, 1)
    assert jnp.allclose(out, ref, atol=5e-3, rtol=1e-2), (
        float(jnp.max(jnp.abs(out - ref))))

    print("KERNEL_OK")
</pallas_src>

<mosaic_0001>
module attributes {stable_mosaic.version = 11 : i64} {
  func.func @reward_mlp_kernel(%arg0: i32, %arg1: memref<256x16xf32, #tpu.memory_space<vmem>>, %arg2: memref<256x8xf32, #tpu.memory_space<vmem>>, %arg3: memref<16x32xbf16, #tpu.memory_space<vmem>>, %arg4: memref<8x32xbf16, #tpu.memory_space<vmem>>, %arg5: memref<1x32xf32, #tpu.memory_space<vmem>>, %arg6: memref<32x32xbf16, #tpu.memory_space<vmem>>, %arg7: memref<1x32xf32, #tpu.memory_space<vmem>>, %arg8: memref<1x32xf32, #tpu.memory_space<vmem>>, %arg9: memref<1x1xf32, #tpu.memory_space<smem>>, %arg10: memref<1x256xf32, #tpu.memory_space<vmem>>) attributes {dimension_semantics = [#tpu.dimension_semantics<parallel>], iteration_bounds = array<i64: 2>, scalar_prefetch = 0 : i64, scratch_operands = 0 : i64, tpu.core_type = #tpu.core_type<tc>, window_params = [{transform_indices = @transform_0, window_bounds = array<i64: 256, 16>}, {transform_indices = @transform_1, window_bounds = array<i64: 256, 8>}, {pipeline_mode = #tpu.pipeline_mode<synchronous>, transform_indices = @transform_2, window_bounds = array<i64: 16, 32>}, {pipeline_mode = #tpu.pipeline_mode<synchronous>, transform_indices = @transform_3, window_bounds = array<i64: 8, 32>}, {pipeline_mode = #tpu.pipeline_mode<synchronous>, transform_indices = @transform_4, window_bounds = array<i64: 1, 32>}, {pipeline_mode = #tpu.pipeline_mode<synchronous>, transform_indices = @transform_5, window_bounds = array<i64: 32, 32>}, {pipeline_mode = #tpu.pipeline_mode<synchronous>, transform_indices = @transform_6, window_bounds = array<i64: 1, 32>}, {pipeline_mode = #tpu.pipeline_mode<synchronous>, transform_indices = @transform_7, window_bounds = array<i64: 1, 32>}, {transform_indices = @transform_8, window_bounds = array<i64: 1, 1>}, {transform_indices = @transform_9, window_bounds = array<i64: 1, 256>}]} {
    %c0 = arith.constant 0 : index
    %c0_0 = arith.constant 0 : index
    %0 = vector.load %arg1[%c0, %c0_0] : memref<256x16xf32, #tpu.memory_space<vmem>>, vector<256x16xf32>
    %1 = arith.truncf %0 : vector<256x16xf32> to vector<256x16xbf16>
    %c0_1 = arith.constant 0 : index
    %c0_2 = arith.constant 0 : index
    %2 = vector.load %arg2[%c0_1, %c0_2] : memref<256x8xf32, #tpu.memory_space<vmem>>, vector<256x8xf32>
    %3 = arith.truncf %2 : vector<256x8xf32> to vector<256x8xbf16>
    %c0_3 = arith.constant 0 : index
    %c0_4 = arith.constant 0 : index
    %4 = vector.load %arg3[%c0_3, %c0_4] : memref<16x32xbf16, #tpu.memory_space<vmem>>, vector<16x32xbf16>
    %cst = arith.constant dense<0.000000e+00> : vector<256x32xf32>
    %5 = tpu.matmul %1, %4, %cst {dimension_numbers = #tpu.dot_dimension_numbers<[1], [0], [0], [1], [0, 0, 1, 1], [], []>} : vector<256x16xbf16>, vector<16x32xbf16>, vector<256x32xf32> -> vector<256x32xf32>
    %c0_5 = arith.constant 0 : index
    %c0_6 = arith.constant 0 : index
    %6 = vector.load %arg4[%c0_5, %c0_6] : memref<8x32xbf16, #tpu.memory_space<vmem>>, vector<8x32xbf16>
    %cst_7 = arith.constant dense<0.000000e+00> : vector<256x32xf32>
    %7 = tpu.matmul %3, %6, %cst_7 {dimension_numbers = #tpu.dot_dimension_numbers<[1], [0], [0], [1], [0, 0, 1, 1], [], []>} : vector<256x8xbf16>, vector<8x32xbf16>, vector<256x32xf32> -> vector<256x32xf32>
    %8 = arith.addf %5, %7 : vector<256x32xf32>
    %c0_8 = arith.constant 0 : index
    %c0_9 = arith.constant 0 : index
    %9 = vector.load %arg5[%c0_8, %c0_9] : memref<1x32xf32, #tpu.memory_space<vmem>>, vector<1x32xf32>
    %10 = vector.broadcast %9 : vector<1x32xf32> to vector<256x32xf32>
    %11 = arith.addf %8, %10 : vector<256x32xf32>
    %cst_10 = arith.constant 0.000000e+00 : f32
    %12 = vector.broadcast %cst_10 : f32 to vector<256x32xf32>
    %13 = arith.maximumf %11, %12 : vector<256x32xf32>
    %14 = arith.truncf %13 : vector<256x32xf32> to vector<256x32xbf16>
    %c0_11 = arith.constant 0 : index
    %c0_12 = arith.constant 0 : index
    %15 = vector.load %arg6[%c0_11, %c0_12] : memref<32x32xbf16, #tpu.memory_space<vmem>>, vector<32x32xbf16>
    %cst_13 = arith.constant dense<0.000000e+00> : vector<256x32xf32>
    %16 = tpu.matmul %14, %15, %cst_13 {dimension_numbers = #tpu.dot_dimension_numbers<[1], [0], [0], [1], [0, 0, 1, 1], [], []>} : vector<256x32xbf16>, vector<32x32xbf16>, vector<256x32xf32> -> vector<256x32xf32>
    %c0_14 = arith.constant 0 : index
    %c0_15 = arith.constant 0 : index
    %17 = vector.load %arg7[%c0_14, %c0_15] : memref<1x32xf32, #tpu.memory_space<vmem>>, vector<1x32xf32>
    %18 = vector.broadcast %17 : vector<1x32xf32> to vector<256x32xf32>
    %19 = arith.addf %16, %18 : vector<256x32xf32>
    %cst_16 = arith.constant 0.000000e+00 : f32
    %20 = vector.broadcast %cst_16 : f32 to vector<256x32xf32>
    %21 = arith.maximumf %19, %20 : vector<256x32xf32>
    %c0_17 = arith.constant 0 : index
    %c0_18 = arith.constant 0 : index
    %22 = vector.load %arg8[%c0_17, %c0_18] : memref<1x32xf32, #tpu.memory_space<vmem>>, vector<1x32xf32>
    %cst_19 = arith.constant dense<0.000000e+00> : vector<1x256xf32>
    %23 = tpu.matmul %22, %21, %cst_19 {dimension_numbers = #tpu.dot_dimension_numbers<[1], [1], [0], [0], [0, 0, 1, 0], [], []>} : vector<1x32xf32>, vector<256x32xf32>, vector<1x256xf32> -> vector<1x256xf32>
    %c0_20 = arith.constant 0 : index
    %c0_21 = arith.constant 0 : index
    %24 = memref.load %arg9[%c0_20, %c0_21] : memref<1x1xf32, #tpu.memory_space<smem>>
    %25 = vector.broadcast %24 : f32 to vector<1x256xf32>
    %26 = arith.addf %23, %25 : vector<1x256xf32>
    %c0_22 = arith.constant 0 : index
    %c0_23 = arith.constant 0 : index
    %27 = vector.load %arg10[%c0_22, %c0_23] : memref<1x256xf32, #tpu.memory_space<vmem>>, vector<1x256xf32>
    tpu.vector_store %arg10[%c0_22, %c0_23], %26 {strides = array<i32>} : memref<1x256xf32, #tpu.memory_space<vmem>>, vector<1x256xf32>,
    return
  }
  func.func @transform_0(%arg0: i32) -> (i32, i32) {
    %c0_i32 = arith.constant 0 : i32
    %c0_i32_0 = arith.constant 0 : i32
    return %arg0, %c0_i32 : i32, i32
  }
  func.func @transform_1(%arg0: i32) -> (i32, i32) {
    %c0_i32 = arith.constant 0 : i32
    %c0_i32_0 = arith.constant 0 : i32
    return %arg0, %c0_i32 : i32, i32
  }
  func.func @transform_2(%arg0: i32) -> (i32, i32) {
    %c0_i32 = arith.constant 0 : i32
    %c0_i32_0 = arith.constant 0 : i32
    %c0_i32_1 = arith.constant 0 : i32
    return %c0_i32, %c0_i32_0 : i32, i32
  }
  func.func @transform_3(%arg0: i32) -> (i32, i32) {
    %c0_i32 = arith.constant 0 : i32
    %c0_i32_0 = arith.constant 0 : i32
    %c0_i32_1 = arith.constant 0 : i32
    return %c0_i32, %c0_i32_0 : i32, i32
  }
  func.func @transform_4(%arg0: i32) -> (i32, i32) {
    %c0_i32 = arith.constant 0 : i32
    %c0_i32_0 = arith.constant 0 : i32
    %c0_i32_1 = arith.constant 0 : i32
    return %c0_i32, %c0_i32_0 : i32, i32
  }
  func.func @transform_5(%arg0: i32) -> (i32, i32) {
    %c0_i32 = arith.constant 0 : i32
    %c0_i32_0 = arith.constant 0 : i32
    %c0_i32_1 = arith.constant 0 : i32
    return %c0_i32, %c0_i32_0 : i32, i32
  }
  func.func @transform_6(%arg0: i32) -> (i32, i32) {
    %c0_i32 = arith.constant 0 : i32
    %c0_i32_0 = arith.constant 0 : i32
    %c0_i32_1 = arith.constant 0 : i32
    return %c0_i32, %c0_i32_0 : i32, i32
  }
  func.func @transform_7(%arg0: i32) -> (i32, i32) {
    %c0_i32 = arith.constant 0 : i32
    %c0_i32_0 = arith.constant 0 : i32
    %c0_i32_1 = arith.constant 0 : i32
    return %c0_i32, %c0_i32_0 : i32, i32
  }
  func.func @transform_8(%arg0: i32) -> (i32, i32) {
    %c0_i32 = arith.constant 0 : i32
    %c0_i32_0 = arith.constant 0 : i32
    %c0_i32_1 = arith.constant 0 : i32
    return %c0_i32, %c0_i32_0 : i32, i32
  }
  func.func @transform_9(%arg0: i32) -> (i32, i32) {
    %c0_i32 = arith.constant 0 : i32
    %c0_i32_0 = arith.constant 0 : i32
    return %c0_i32, %arg0 : i32, i32
  }
}

</mosaic_0001>

<bundles_post_ra>
// kernel: tpu_custom_call.1
= control target key start
LH: loop header
LB: loop body
LE: loop exit
PB: predicated region body
PF: predicated region fallthrough
CT: control target
= control target key end

     0   :  { %s1977_s0 = inlined_call_operand.vmem [shape: f32[300,16], index: 0, kind: input, shape index: {}]   ;;  %s1978_s1 = inlined_call_operand.vmem [shape: f32[300,8], index: 1, kind: input, shape index: {}]   ;;  %s1979_s2 = inlined_call_operand.vmem [shape: bf16[16,32], index: 2, kind: input, shape index: {}]   ;;  %s1980_s3 = inlined_call_operand.vmem [shape: bf16[8,32], index: 3, kind: input, shape index: {}]   ;;  %s1981_s4 = inlined_call_operand.vmem [shape: f32[1,32], index: 4, kind: input, shape index: {}]   ;;  %s1982_s5 = inlined_call_operand.vmem [shape: bf16[32,32], index: 5, kind: input, shape index: {}]   ;;  %s1983_s6 = inlined_call_operand.vmem [shape: f32[1,32], index: 6, kind: input, shape index: {}]   ;;  %s1984_s7 = inlined_call_operand.vmem [shape: f32[1,32], index: 7, kind: input, shape index: {}]   ;;  %s1985_s8 = inlined_call_operand.<no memory space> [shape: f32[1,1], index: 8, kind: input, shape index: {}]   ;;  %s1986_s9 = inlined_call_operand.hbm [shape: f32[1,300], index: 9, kind: output, shape index: {}]  }
   0x1   :  { %14 = sst [smem:[#allocation2]] %s1985_s8 }
   0x2   :  { %15 = vsyncpa [#allocation4], 0 }
   0x3   :  { %17 = vsyncpa [#allocation4 + $0x1], 0  ;;  %s1585_s11 = smov 0   ;;  %s1587_s12 = smov 0  }
   0x4   :  { %s1589_s13 = smov 0   ;;  %s1591_s14 = smov 0  }
   0x5 LB: > { %s1606_s8 = sadd.s32 4294967295, %s1529_s14   ;;  %s1305_s15 = sadd.s32 4294967294, %s1529_s14   ;;  %s1529_s14 = sphi %s1591_s14, %s1997_s14   ;;  %s1525_s13 = sphi %s1589_s13, %s1996_s13   ;;  %s1521_s12 = sphi %s1587_s12, %s1995_s12   ;;  %s1517_s11 = sphi %s1585_s11, %s1994_s11  }
   0x6   : > { %s1610_s16 = sadd.s32 1, %s1529_s14   ;;  %s229_s17 = sadd.s32 1, %s1525_s13 }
   0x7   : > { %s226_s18 = ssub.s32 %s1529_s14, %s1610_s16  ;;  %p239_p0 = scmp.ne.s32.totalorder %s1525_s13, %s1521_s12 }
   0x8   : > { %p227_p1 = scmp.eq.s32.totalorder %s226_s18, 0  ;;  %p240_p2 = scmp.eq.s32.totalorder %s1606_s8, 1 }
   0x9   : > { %p245_p3 = scmp.ne.s32.totalorder %s1521_s12, %s1517_s11  ;;  %p246_p4 = scmp.eq.s32.totalorder %s1305_s15, 1 }
   0xa   : > { %s1621_s19 = scalar_select %p227_p1, %s1525_s13, %s229_s17  }
   0xb   : > { %p1623_p5 = por %p240_p2, %p239_p0  ;;  %p1627_p6 = por %p246_p4, %p245_p3 }
   0xc   : > { %p1308_p7 = scmp.ge.s32.totalorder %s1529_s14, 1  ;;  %p319_p8 = scmp.lt.s32.totalorder %s1529_s14, 3 }
   0xe   : > { %p320_p9 = pnand %p1308_p7, %p319_p8 }
   0xf   : > { %s1310_s26 = sshll.u32 (!%p320_p9), %s1606_s8, 5  ;;  %s365_s10 = sand.u32 (!%p320_p9), 1, %s1521_s12  }
  0x10   : > { %323 = sbr.rel (%p320_p9) target bundleno = 795 (0x31b), region = 56  ;;  %p373_p10 = scmp.lt.s32.totalorder (!%p320_p9), %s1310_s26, 37 }
  0x11   : > { %s1061_s15 = sld [smem:[#allocation2]] (!%p320_p9)  ;;  %s1922_s22 = scalar_lea.sflag (!%p320_p9), [#allocation4], %s365_s10 }
  0x15   : > { %v499_v0 = vld [vmem:[%s1980_s3] sm:$0xf]  ;;  %vm549_vm0 = vcmask 1043456   ;;  %s1999_s26 = smov (!%p373_p10, %s1310_s26), 37  ;;  %vm500_vm1 = vcmask 64512   ;;  %vm648_vm2 = vcmask 130048  }
  0x16   : > { %v1413_v1 = vld [vmem:[%s1979_s2] sm:$0xff]  ;;  %v551_v2 = vsel %vm549_vm0, %v499_v0, 0  ;;  %s1311_s27 = sshll.u32 %s1999_s26, 3  ;;  %v1415_v45 = vld [vmem:[%s1982_s5 + $0x8] sm:$0xff]  ;;  %vm890_vm3 = vcmask 261120   ;;  %vm1205_vm4 = vcmask 1040384  }
  0x17   : > { %560 = vmatpush.bf16.msra.mxu0 %v551_v2  ;;  %704 = vmatpush.bf16.msra.mxu1 %v1413_v1  ;;  %s1643_s30 = scalar_lea.vmem %s1978_s1, %s1311_s27  ;;  %s1648_s17 = scalar_lea.vmem %s1977_s0, %s1311_s27  ;;  %v1414_v50 = vld [vmem:[%s1982_s5] sm:$0xff] }
  0x18   : > { %v449_v3 = vld [vmem:[%s1643_s30] sm:$0xff]  ;;  %v450_v4 = vld [vmem:[%s1643_s30 + $0x8] sm:$0xff]  ;;  %v451_v9 = vld [vmem:[%s1643_s30 + $0x10] sm:$0xff]  ;;  %945 = vmatpush.bf16.msra.mxu2 %v1415_v45 }
  0x19   : > { %v401_v5 = vld [vmem:[%s1648_s17] sm:$0xff]  ;;  %v481_v6 = vpack.c.bf16 %v450_v4, %v449_v3  ;;  %v402_v7 = vld [vmem:[%s1648_s17 + $0x8] sm:$0xff]  ;;  %v452_v10 = vld [vmem:[%s1643_s30 + $0x18] sm:$0xff] }
  0x1a   : > { %v433_v8 = vpack.c.bf16 %v402_v7, %v401_v5  ;;  %v403_v11 = vld [vmem:[%s1648_s17 + $0x10] sm:$0xff]  ;;  %v404_v12 = vld [vmem:[%s1648_s17 + $0x18] sm:$0xff]  ;;  %v482_v13 = vpack.c.bf16 %v452_v10, %v451_v9  ;;  %v453_v15 = vld [vmem:[%s1643_s30 + $0x20] sm:$0xff] }
  0x1b   : > { %1314 = vmatmul.msk.bf16.vlgmr.msra.gmra.mxu0 %vm500_vm1, %v481_v6  ;;  %v434_v14 = vpack.c.bf16 %v404_v12, %v403_v11  ;;  %v454_v16 = vld [vmem:[%s1643_s30 + $0x28] sm:$0xff]  ;;  %v405_v17 = vld [vmem:[%s1648_s17 + $0x20] sm:$0xff]  ;;  %v455_v21 = vld [vmem:[%s1643_s30 + $0x30] sm:$0xff] }
  0x1c   : > { %1334 = vmatmul.msk.bf16.vlgmr.msra.gmra.mxu1 %vm648_vm2, %v433_v8  ;;  %v406_v18 = vld [vmem:[%s1648_s17 + $0x28] sm:$0xff]  ;;  %v483_v19 = vpack.c.bf16 %v454_v16, %v453_v15  ;;  %v456_v22 = vld [vmem:[%s1643_s30 + $0x38] sm:$0xff]  ;;  %v407_v23 = vld [vmem:[%s1648_s17 + $0x30] sm:$0xff]  ;;  %946 = vmatpush.bf16.msra.mxu2 %v1414_v50 }
  0x1d   : > { %v435_v20 = vpack.c.bf16 %v406_v18, %v405_v17  ;;  %v408_v24 = vld [vmem:[%s1648_s17 + $0x38] sm:$0xff]  ;;  %v484_v25 = vpack.c.bf16 %v456_v22, %v455_v21  ;;  %v457_v27 = vld [vmem:[%s1643_s30 + $0x40] sm:$0xff]  ;;  %v458_v28 = vld [vmem:[%s1643_s30 + $0x48] sm:$0xff] }
  0x1e   : > { %v436_v26 = vpack.c.bf16 %v408_v24, %v407_v23  ;;  %v409_v29 = vld [vmem:[%s1648_s17 + $0x40] sm:$0xff]  ;;  %v410_v30 = vld [vmem:[%s1648_s17 + $0x48] sm:$0xff]  ;;  %v485_v31 = vpack.c.bf16 %v458_v28, %v457_v27  ;;  %v459_v33 = vld [vmem:[%s1643_s30 + $0x50] sm:$0xff] }
  0x1f   : > { %v437_v32 = vpack.c.bf16 %v410_v30, %v409_v29  ;;  %v460_v34 = vld [vmem:[%s1643_s30 + $0x58] sm:$0xff]  ;;  %v411_v35 = vld [vmem:[%s1648_s17 + $0x50] sm:$0xff]  ;;  %v461_v39 = vld [vmem:[%s1643_s30 + $0x60] sm:$0xff] }
  0x20   : > { %v412_v36 = vld [vmem:[%s1648_s17 + $0x58] sm:$0xff]  ;;  %v486_v37 = vpack.c.bf16 %v460_v34, %v459_v33  ;;  %v462_v40 = vld [vmem:[%s1643_s30 + $0x68] sm:$0xff]  ;;  %v413_v41 = vld [vmem:[%s1648_s17 + $0x60] sm:$0xff] }
  0x21   : > { %v438_v38 = vpack.c.bf16 %v412_v36, %v411_v35  ;;  %v414_v42 = vld [vmem:[%s1648_s17 + $0x68] sm:$0xff]  ;;  %v487_v43 = vpack.c.bf16 %v462_v40, %v461_v39  ;;  %v463_v46 = vld [vmem:[%s1643_s30 + $0x70] sm:$0xff]  ;;  %v464_v47 = vld [vmem:[%s1643_s30 + $0x78] sm:$0xff] }
  0x22   : > { %v439_v44 = vpack.c.bf16 %v414_v42, %v413_v41  ;;  %v415_v48 = vld [vmem:[%s1648_s17 + $0x70] sm:$0xff]  ;;  %v416_v49 = vld [vmem:[%s1648_s17 + $0x78] sm:$0xff]  ;;  %v488_v51 = vpack.c.bf16 %v464_v47, %v463_v46  ;;  %v465_v53 = vld [vmem:[%s1643_s30 + $0x80] sm:$0xff] }
  0x23   : > { %v440_v52 = vpack.c.bf16 %v416_v49, %v415_v48  ;;  %v466_v54 = vld [vmem:[%s1643_s30 + $0x88] sm:$0xff]  ;;  %v417_v55 = vld [vmem:[%s1648_s17 + $0x80] sm:$0xff]  ;;  %v467_v4 = vld [vmem:[%s1643_s30 + $0x90] sm:$0xff] }
  0x24   : > { %v418_v56 = vld [vmem:[%s1648_s17 + $0x88] sm:$0xff]  ;;  %v489_v57 = vpack.c.bf16 %v466_v54, %v465_v53  ;;  %v1713_v62 = vld [vmem:[%s1981_s4] ss:$0 sm:$0xff]  ;;  %v468_v5 = vld [vmem:[%s1643_s30 + $0x98] sm:$0xff] }
  0x25   : > { %v441_v59 = vpack.c.bf16 %v418_v56, %v417_v55  ;;  %v419_v6 = vld [vmem:[%s1648_s17 + $0x90] sm:$0xff]  ;;  %v420_v7 = vld [vmem:[%s1648_s17 + $0x98] sm:$0xff]  ;;  %v490_v10 = vpack.c.bf16 %v468_v5, %v467_v4  ;;  %v469_v21 = vld [vmem:[%s1643_s30 + $0xa0] sm:$0xff] }
  0x26   : > { %v470_v22 = vld [vmem:[%s1643_s30 + $0xa8] sm:$0xff]  ;;  %v421_v23 = vld [vmem:[%s1648_s17 + $0xa0] sm:$0xff]  ;;  %v472_v39 = vld [vmem:[%s1643_s30 + $0xb8] sm:$0xff] }
  0x27   : > { %v422_v24 = vld [vmem:[%s1648_s17 + $0xa8] sm:$0xff]  ;;  %v491_v27 = vpack.c.bf16 %v470_v22, %v469_v21  ;;  %v423_v40 = vld [vmem:[%s1648_s17 + $0xb0] sm:$0xff]  ;;  %v424_v41 = vld [vmem:[%s1648_s17 + $0xb8] sm:$0xff] }
  0x28   : > { %v443_v30 = vpack.c.bf16 %v422_v24, %v421_v23  ;;  %v444_v47 = vpack.c.bf16 %v424_v41, %v423_v40  ;;  %v473_v55 = vld [vmem:[%s1643_s30 + $0xc0] sm:$0xff]  ;;  %v474_v56 = vld [vmem:[%s1643_s30 + $0xc8] sm:$0xff] }
  0x2b   : > { %1315 = vmatmul.msk.bf16.gmra.mxu0 %vm500_vm1, %v482_v13  ;;  %v442_v13 = vpack.c.bf16 %v420_v7, %v419_v6 }
  0x2c   : > { %1335 = vmatmul.msk.bf16.gmra.mxu1 %vm648_vm2, %v434_v14 }
  0x3b   : > { %1316 = vmatmul.msk.bf16.gmra.mxu0 %vm500_vm1, %v483_v19 }
  0x3c   : > { %1336 = vmatmul.msk.bf16.gmra.mxu1 %vm648_vm2, %v435_v20 }
  0x4b   : > { %1317 = vmatmul.msk.bf16.gmra.mxu0 %vm500_vm1, %v484_v25 }
  0x4c   : > { %1337 = vmatmul.msk.bf16.gmra.mxu1 %vm648_vm2, %v436_v26 }
  0x5b   : > { %1318 = vmatmul.msk.bf16.gmra.mxu0 %vm500_vm1, %v485_v31 }
  0x5c   : > { %1338 = vmatmul.msk.bf16.gmra.mxu1 %vm648_vm2, %v437_v32 }
  0x6b   : > { %1319 = vmatmul.msk.bf16.gmra.mxu0 %vm500_vm1, %v486_v37 }
  0x6c   : > { %1339 = vmatmul.msk.bf16.gmra.mxu1 %vm648_vm2, %v438_v38  ;;  %v471_v38 = vld [vmem:[%s1643_s30 + $0xb0] sm:$0xff] }
  0x7b   : > { %1320 = vmatmul.msk.bf16.gmra.mxu0 %vm500_vm1, %v487_v43 }
  0x7c   : > { %1340 = vmatmul.msk.bf16.gmra.mxu1 %vm648_vm2, %v439_v44  ;;  %v492_v44 = vpack.c.bf16 %v472_v39, %v471_v38 }
  0x8b   : > { %1321 = vmatmul.msk.bf16.gmra.mxu0 %vm500_vm1, %v488_v51 }
  0x8c   : > { %1341 = vmatmul.msk.bf16.gmra.mxu1 %vm648_vm2, %v440_v52 }
  0x98   : > { %v562_v58 = vpop.f32.mrf.mxu0 }
  0x99   : > { %v706_v60 = vpop.f32.mrf.mxu1 }
  0x9a   : > { %v707_v61 = vadd.f32 %v706_v60, %v562_v58  ;;  %v426_v58 = vld [vmem:[%s1648_s17 + $0xc8] sm:$0xff] }
  0x9b   : > { %1322 = vmatmul.msk.bf16.gmra.mxu0 %vm500_vm1, %v489_v57  ;;  %v425_v57 = vld [vmem:[%s1648_s17 + $0xc0] sm:$0xff] }
  0x9c   : > { %1342 = vmatmul.msk.bf16.gmra.mxu1 %vm648_vm2, %v441_v59  ;;  %v790_v1 = vadd.f32 %v1713_v62, %v707_v61  ;;  %v493_v61 = vpack.c.bf16 %v474_v56, %v473_v55 }
  0x9e   : > { %v822_v8 = vmax.f32 %v790_v1, 0.0  ;;  %v445_v1 = vpack.c.bf16 %v426_v58, %v425_v57 }
  0xa0   : > { %v564_v63 = vpop.f32.mrf.mxu0 }
  0xa1   : > { %v708_v0 = vpop.f32.mrf.mxu1 }
  0xa2   : > { %v709_v2 = vadd.f32 %v708_v0, %v564_v63 }
  0xa4   : > { %v791_v3 = vadd.f32 %v1713_v62, %v709_v2 }
  0xa6   : > { %v823_v9 = vmax.f32 %v791_v3, 0.0 }
  0xa8   : > { %v567_v11 = vpop.f32.mrf.mxu0  ;;  %v854_v12 = vpack.c.bf16 %v823_v9, %v822_v8  ;;  %v475_v9 = vld [vmem:[%s1643_s30 + $0xd0] sm:$0xff] }
  0xa9   : > { %v711_v14 = vpop.f32.mrf.mxu1 }
  0xaa   : > { %1358 = vmatmul.msk.bf16.vlgmr.msra.gmra.mxu2 %vm890_vm3, %v854_v12  ;;  %v712_v15 = vadd.f32 %v711_v14, %v567_v11  ;;  %v427_v11 = vld [vmem:[%s1648_s17 + $0xd0] sm:$0xff]  ;;  %v428_v12 = vld [vmem:[%s1648_s17 + $0xd8] sm:$0xff] }
  0xab   : > { %1323 = vmatmul.msk.bf16.gmra.mxu0 %vm500_vm1, %v490_v10  ;;  %v476_v10 = vld [vmem:[%s1643_s30 + $0xd8] sm:$0xff] }
  0xac   : > { %1343 = vmatmul.msk.bf16.gmra.mxu1 %vm648_vm2, %v442_v13  ;;  %v792_v18 = vadd.f32 %v1713_v62, %v712_v15  ;;  %v494_v15 = vpack.c.bf16 %v476_v10, %v475_v9 }
  0xae   : > { %v824_v25 = vmax.f32 %v792_v18, 0.0  ;;  %v446_v18 = vpack.c.bf16 %v428_v12, %v427_v11 }
  0xb0   : > { %v569_v16 = vpop.f32.mrf.mxu0 }
  0xb1   : > { %v713_v17 = vpop.f32.mrf.mxu1 }
  0xb2   : > { %v714_v19 = vadd.f32 %v713_v17, %v569_v16 }
  0xb4   : > { %v793_v20 = vadd.f32 %v1713_v62, %v714_v19 }
  0xb6   : > { %v825_v26 = vmax.f32 %v793_v20, 0.0 }
  0xb8   : > { %v572_v28 = vpop.f32.mrf.mxu0  ;;  %v855_v29 = vpack.c.bf16 %v825_v26, %v824_v25  ;;  %v477_v26 = vld [vmem:[%s1643_s30 + $0xe0] sm:$0xff] }
  0xb9   : > { %v716_v31 = vpop.f32.mrf.mxu1 }
  0xba   : > { %1359 = vmatmul.msk.bf16.gmra.mxu2 %vm890_vm3, %v855_v29  ;;  %v717_v32 = vadd.f32 %v716_v31, %v572_v28  ;;  %v429_v28 = vld [vmem:[%s1648_s17 + $0xe0] sm:$0xff]  ;;  %v430_v29 = vld [vmem:[%s1648_s17 + $0xe8] sm:$0xff] }
  0xbb   : > { %1324 = vmatmul.msk.bf16.gmra.mxu0 %vm500_vm1, %v491_v27  ;;  %v478_v27 = vld [vmem:[%s1643_s30 + $0xe8] sm:$0xff] }
  0xbc   : > { %1344 = vmatmul.msk.bf16.gmra.mxu1 %vm648_vm2, %v443_v30  ;;  %v794_v35 = vadd.f32 %v1713_v62, %v717_v32  ;;  %v495_v32 = vpack.c.bf16 %v478_v27, %v477_v26 }
  0xbe   : > { %v826_v42 = vmax.f32 %v794_v35, 0.0  ;;  %v447_v35 = vpack.c.bf16 %v430_v29, %v429_v28 }
  0xc0   : > { %v574_v33 = vpop.f32.mrf.mxu0 }
  0xc1   : > { %v718_v34 = vpop.f32.mrf.mxu1 }
  0xc2   : > { %v719_v36 = vadd.f32 %v718_v34, %v574_v33 }
  0xc4   : > { %v795_v37 = vadd.f32 %v1713_v62, %v719_v36 }
  0xc6   : > { %v827_v43 = vmax.f32 %v795_v37, 0.0 }
  0xc8   : > { %v577_v45 = vpop.f32.mrf.mxu0  ;;  %v856_v46 = vpack.c.bf16 %v827_v43, %v826_v42  ;;  %v479_v43 = vld [vmem:[%s1643_s30 + $0xf0] sm:$0xff] }
  0xc9   : > { %v721_v48 = vpop.f32.mrf.mxu1 }
  0xca   : > { %1360 = vmatmul.msk.bf16.gmra.mxu2 %vm890_vm3, %v856_v46  ;;  %v722_v49 = vadd.f32 %v721_v48, %v577_v45  ;;  %v431_v45 = vld [vmem:[%s1648_s17 + $0xf0] sm:$0xff]  ;;  %v432_v46 = vld [vmem:[%s1648_s17 + $0xf8] sm:$0xff]  ;;  %s1309_s17 = sshll.u32 %s365_s10, 1 }
  0xcb   : > { %1325 = vmatmul.msk.bf16.gmra.mxu0 %vm500_vm1, %v492_v44  ;;  %v480_v44 = vld [vmem:[%s1643_s30 + $0xf8] sm:$0xff]  ;;  %s367_s18 = scalar_lea.vmem [#allocation3], %s1309_s17 }
  0xcc   : > { %1345 = vmatmul.msk.bf16.gmra.mxu1 %vm648_vm2, %v444_v47  ;;  %v796_v52 = vadd.f32 %v1713_v62, %v722_v49  ;;  %v496_v49 = vpack.c.bf16 %v480_v44, %v479_v43 }
  0xce   : > { %v828_v59 = vmax.f32 %v796_v52, 0.0  ;;  %v448_v52 = vpack.c.bf16 %v432_v46, %v431_v45 }
  0xd0   : > { %v579_v50 = vpop.f32.mrf.mxu0 }
  0xd1   : > { %v723_v51 = vpop.f32.mrf.mxu1 }
  0xd2   : > { %v724_v53 = vadd.f32 %v723_v51, %v579_v50 }
  0xd4   : > { %v797_v54 = vadd.f32 %v1713_v62, %v724_v53 }
  0xd6   : > { %v829_v60 = vmax.f32 %v797_v54, 0.0 }
  0xd8   : > { %v582_v63 = vpop.f32.mrf.mxu0  ;;  %v857_v0 = vpack.c.bf16 %v829_v60, %v828_v59 }
  0xd9   : > { %v726_v2 = vpop.f32.mrf.mxu1 }
  0xda   : > { %1361 = vmatmul.msk.bf16.gmra.mxu2 %vm890_vm3, %v857_v0  ;;  %v727_v3 = vadd.f32 %v726_v2, %v582_v63 }
  0xdb   : > { %1326 = vmatmul.msk.bf16.gmra.mxu0 %vm500_vm1, %v493_v61 }
  0xdc   : > { %1346 = vmatmul.msk.bf16.gmra.mxu1 %vm648_vm2, %v445_v1  ;;  %v798_v6 = vadd.f32 %v1713_v62, %v727_v3 }
  0xde   : > { %v830_v13 = vmax.f32 %v798_v6, 0.0 }
  0xe0   : > { %v584_v4 = vpop.f32.mrf.mxu0 }
  0xe1   : > { %v728_v5 = vpop.f32.mrf.mxu1 }
  0xe2   : > { %v729_v7 = vadd.f32 %v728_v5, %v584_v4 }
  0xe4   : > { %v799_v8 = vadd.f32 %v1713_v62, %v729_v7 }
  0xe6   : > { %v831_v14 = vmax.f32 %v799_v8, 0.0 }
  0xe8   : > { %v587_v16 = vpop.f32.mrf.mxu0  ;;  %v858_v17 = vpack.c.bf16 %v831_v14, %v830_v13 }
  0xe9   : > { %v731_v19 = vpop.f32.mrf.mxu1 }
  0xea   : > { %1362 = vmatmul.msk.bf16.gmra.mxu2 %vm890_vm3, %v858_v17  ;;  %v732_v20 = vadd.f32 %v731_v19, %v587_v16 }
  0xeb   : > { %1327 = vmatmul.msk.bf16.gmra.mxu0 %vm500_vm1, %v494_v15 }
  0xec   : > { %1347 = vmatmul.msk.bf16.gmra.mxu1 %vm648_vm2, %v446_v18  ;;  %v800_v23 = vadd.f32 %v1713_v62, %v732_v20 }
  0xee   : > { %v832_v30 = vmax.f32 %v800_v23, 0.0 }
  0xf0   : > { %v589_v21 = vpop.f32.mrf.mxu0 }
  0xf1   : > { %v733_v22 = vpop.f32.mrf.mxu1 }
  0xf2   : > { %v734_v24 = vadd.f32 %v733_v22, %v589_v21 }
  0xf4   : > { %v801_v25 = vadd.f32 %v1713_v62, %v734_v24 }
  0xf6   : > { %v833_v31 = vmax.f32 %v801_v25, 0.0 }
  0xf8   : > { %v592_v33 = vpop.f32.mrf.mxu0  ;;  %v859_v34 = vpack.c.bf16 %v833_v31, %v832_v30 }
  0xf9   : > { %v736_v36 = vpop.f32.mrf.mxu1 }
  0xfa   : > { %1363 = vmatmul.msk.bf16.gmra.mxu2 %vm890_vm3, %v859_v34  ;;  %v737_v37 = vadd.f32 %v736_v36, %v592_v33 }
  0xfb   : > { %1328 = vmatmul.msk.bf16.gmra.mxu0 %vm500_vm1, %v495_v32 }
  0xfc   : > { %1348 = vmatmul.msk.bf16.gmra.mxu1 %vm648_vm2, %v447_v35  ;;  %v802_v40 = vadd.f32 %v1713_v62, %v737_v37 }
  0xfe   : > { %v834_v47 = vmax.f32 %v802_v40, 0.0 }
 0x100   : > { %v594_v38 = vpop.f32.mrf.mxu0 }
 0x101   : > { %v738_v39 = vpop.f32.mrf.mxu1 }
 0x102   : > { %v739_v41 = vadd.f32 %v738_v39, %v594_v38 }
 0x104   : > { %v803_v42 = vadd.f32 %v1713_v62, %v739_v41 }
 0x106   : > { %v835_v48 = vmax.f32 %v803_v42, 0.0 }
 0x108   : > { %v597_v50 = vpop.f32.mrf.mxu0  ;;  %v860_v51 = vpack.c.bf16 %v835_v48, %v834_v47 }
 0x109   : > { %v741_v53 = vpop.f32.mrf.mxu1 }
 0x10a   : > { %1364 = vmatmul.msk.bf16.gmra.mxu2 %vm890_vm3, %v860_v51  ;;  %v742_v54 = vadd.f32 %v741_v53, %v597_v50 }
 0x10b   : > { %1329 = vmatmul.msk.bf16.gmra.mxu0 %vm500_vm1, %v496_v49 }
 0x10c   : > { %1349 = vmatmul.msk.bf16.gmra.mxu1 %vm648_vm2, %v448_v52  ;;  %v804_v57 = vadd.f32 %v1713_v62, %v742_v54 }
 0x10e   : > { %v836_v60 = vmax.f32 %v804_v57, 0.0 }
 0x110   : > { %v599_v55 = vpop.f32.mrf.mxu0 }
 0x111   : > { %v743_v56 = vpop.f32.mrf.mxu1 }
 0x112   : > { %v744_v58 = vadd.f32 %v743_v56, %v599_v55 }
 0x114   : > { %v805_v59 = vadd.f32 %v1713_v62, %v744_v58 }
 0x116   : > { %v837_v61 = vmax.f32 %v805_v59, 0.0 }
 0x118   : > { %v602_v63 = vpop.f32.mrf.mxu0  ;;  %v861_v0 = vpack.c.bf16 %v837_v61, %v836_v60 }
 0x119   : > { %v746_v1 = vpop.f32.mrf.mxu1 }
 0x11a   : > { %1365 = vmatmul.msk.bf16.gmra.mxu2 %vm890_vm3, %v861_v0  ;;  %v747_v2 = vadd.f32 %v746_v1, %v602_v63 }
 0x11c   : > { %v806_v5 = vadd.f32 %v1713_v62, %v747_v2 }
 0x11e   : > { %v838_v8 = vmax.f32 %v806_v5, 0.0 }
 0x120   : > { %v604_v3 = vpop.f32.mrf.mxu0 }
 0x121   : > { %v748_v4 = vpop.f32.mrf.mxu1 }
 0x122   : > { %v749_v6 = vadd.f32 %v748_v4, %v604_v3 }
 0x124   : > { %v807_v7 = vadd.f32 %v1713_v62, %v749_v6 }
 0x126   : > { %v839_v9 = vmax.f32 %v807_v7, 0.0 }
 0x128   : > { %v607_v10 = vpop.f32.mrf.mxu0  ;;  %v862_v11 = vpack.c.bf16 %v839_v9, %v838_v8 }
 0x129   : > { %v751_v12 = vpop.f32.mrf.mxu1 }
 0x12a   : > { %1366 = vmatmul.msk.bf16.gmra.mxu2 %vm890_vm3, %v862_v11  ;;  %v752_v14 = vadd.f32 %v751_v12, %v607_v10 }
 0x12c   : > { %v808_v17 = vadd.f32 %v1713_v62, %v752_v14 }
 0x12d   : > { %v1784_v13 = vpop.f32.mrf.mxu2 }
 0x12e   : > { %v840_v21 = vmax.f32 %v808_v17, 0.0 }
 0x130   : > { %v609_v15 = vpop.f32.mrf.mxu0 }
 0x131   : > { %v753_v16 = vpop.f32.mrf.mxu1 }
 0x132   : > { %v754_v18 = vadd.f32 %v753_v16, %v609_v15 }
 0x134   : > { %v809_v19 = vadd.f32 %v1713_v62, %v754_v18 }
 0x135   : > { %v1788_v20 = vpop.f32.mrf.mxu2 }
 0x136   : > { %v841_v22 = vmax.f32 %v809_v19, 0.0 }
 0x138   : > { %v612_v23 = vpop.f32.mrf.mxu0  ;;  %v863_v24 = vpack.c.bf16 %v841_v22, %v840_v21 }
 0x139   : > { %v756_v25 = vpop.f32.mrf.mxu1 }
 0x13a   : > { %1367 = vmatmul.msk.bf16.gmra.mxu2 %vm890_vm3, %v863_v24  ;;  %v757_v27 = vadd.f32 %v756_v25, %v612_v23 }
 0x13c   : > { %v810_v30 = vadd.f32 %v1713_v62, %v757_v27 }
 0x13d   : > { %v1791_v26 = vpop.f32.mrf.mxu2 }
 0x13e   : > { %v842_v34 = vmax.f32 %v810_v30, 0.0 }
 0x140   : > { %v614_v28 = vpop.f32.mrf.mxu0 }
 0x141   : > { %v758_v29 = vpop.f32.mrf.mxu1 }
 0x142   : > { %v759_v31 = vadd.f32 %v758_v29, %v614_v28 }
 0x144   : > { %v811_v32 = vadd.f32 %v1713_v62, %v759_v31 }
 0x145   : > { %v1795_v33 = vpop.f32.mrf.mxu2 }
 0x146   : > { %v843_v35 = vmax.f32 %v811_v32, 0.0 }
 0x148   : > { %v617_v36 = vpop.f32.mrf.mxu0  ;;  %v864_v37 = vpack.c.bf16 %v843_v35, %v842_v34 }
 0x149   : > { %v761_v38 = vpop.f32.mrf.mxu1 }
 0x14a   : > { %1368 = vmatmul.msk.bf16.gmra.mxu2 %vm890_vm3, %v864_v37  ;;  %v762_v40 = vadd.f32 %v761_v38, %v617_v36 }
 0x14c   : > { %v812_v43 = vadd.f32 %v1713_v62, %v762_v40 }
 0x14d   : > { %v1798_v39 = vpop.f32.mrf.mxu2 }
 0x14e   : > { %v844_v47 = vmax.f32 %v812_v43, 0.0 }
 0x150   : > { %v619_v41 = vpop.f32.mrf.mxu0 }
 0x151   : > { %v763_v42 = vpop.f32.mrf.mxu1 }
 0x152   : > { %v764_v44 = vadd.f32 %v763_v42, %v619_v41 }
 0x154   : > { %v813_v45 = vadd.f32 %v1713_v62, %v764_v44 }
 0x155   : > { %v1802_v46 = vpop.f32.mrf.mxu2 }
 0x156   : > { %v845_v48 = vmax.f32 %v813_v45, 0.0  ;;  %v1826_v45 = vld [vmem:[%s1983_s6] ss:$0 sm:$0xff] }
 0x158   : > { %v622_v49 = vpop.f32.mrf.mxu0  ;;  %v865_v50 = vpack.c.bf16 %v845_v48, %v844_v47 }
 0x159   : > { %v766_v51 = vpop.f32.mrf.mxu1 }
 0x15a   : > { %1369 = vmatmul.msk.bf16.gmra.mxu2 %vm890_vm3, %v865_v50  ;;  %v767_v53 = vadd.f32 %v766_v51, %v622_v49 }
 0x15c   : > { %v814_v56 = vadd.f32 %v1713_v62, %v767_v53 }
 0x15d   : > { %v1805_v52 = vpop.f32.mrf.mxu2 }
 0x15e   : > { %v846_v60 = vmax.f32 %v814_v56, 0.0 }
 0x160   : > { %v624_v54 = vpop.f32.mrf.mxu0 }
 0x161   : > { %v768_v55 = vpop.f32.mrf.mxu1 }
 0x162   : > { %v769_v57 = vadd.f32 %v768_v55, %v624_v54 }
 0x164   : > { %v815_v58 = vadd.f32 %v1713_v62, %v769_v57 }
 0x165   : > { %v1809_v59 = vpop.f32.mrf.mxu2 }
 0x166   : > { %v847_v61 = vmax.f32 %v815_v58, 0.0 }
 0x168   : > { %v866_v63 = vpack.c.bf16 %v847_v61, %v846_v60  ;;  %v627_v0 = vpop.f32.mrf.mxu0 }
 0x169   : > { %v771_v1 = vpop.f32.mrf.mxu1 }
 0x16a   : > { %1370 = vmatmul.msk.bf16.gmra.mxu2 %vm890_vm3, %v866_v63  ;;  %v772_v3 = vadd.f32 %v771_v1, %v627_v0 }
 0x16c   : > { %v816_v6 = vadd.f32 %v1713_v62, %v772_v3 }
 0x16d   : > { %v1812_v2 = vpop.f32.mrf.mxu2 }
 0x16e   : > { %v848_v10 = vmax.f32 %v816_v6, 0.0  ;;  %v969_v3 = vadd.f32 %v1826_v45, %v1812_v2  ;;  %v961_v2 = vadd.f32 %v1826_v45, %v1802_v46  ;;  %v954_v46 = vadd.f32 %v1826_v45, %v1791_v26 }
 0x170   : > { %v629_v4 = vpop.f32.mrf.mxu0  ;;  %v1036_v6 = vmax.f32 %v969_v3, 0.0 }
 0x171   : > { %v773_v5 = vpop.f32.mrf.mxu1 }
 0x172   : > { %v774_v7 = vadd.f32 %v773_v5, %v629_v4  ;;  %v966_v5 = vadd.f32 %v1826_v45, %v1809_v59  ;;  %v959_v59 = vadd.f32 %v1826_v45, %v1798_v39  ;;  %v1030_v39 = vmax.f32 %v954_v46, 0.0 }
 0x174   : > { %v817_v8 = vadd.f32 %v1713_v62, %v774_v7 }
 0x175   : > { %v970_v9 = vpop.f32.mrf.mxu2 }
 0x176   : > { %v849_v11 = vmax.f32 %v817_v8, 0.0  ;;  %v971_v63 = vadd.f32 %v1826_v45, %v970_v9  ;;  %v964_v8 = vadd.f32 %v1826_v45, %v1805_v52  ;;  %v1035_v9 = vmax.f32 %v966_v5, 0.0 }
 0x177   : > { %v956_v52 = vadd.f32 %v1826_v45, %v1795_v33  ;;  %v949_v33 = vadd.f32 %v1826_v45, %v1784_v13 }
 0x178   : > { %v867_v12 = vpack.c.bf16 %v849_v11, %v848_v10  ;;  %v632_v14 = vpop.f32.mrf.mxu0  ;;  %v1037_v4 = vmax.f32 %v971_v63, 0.0  ;;  %v1034_v10 = vmax.f32 %v964_v8, 0.0  ;;  %v1208_v8 = vlaneseq }
 0x179   : > { %v776_v15 = vpop.f32.mrf.mxu1 }
 0x17a   : > { %1371 = vmatmul.msk.bf16.gmra.mxu2 %vm890_vm3, %v867_v12  ;;  %v777_v17 = vadd.f32 %v776_v15, %v632_v14  ;;  %v1033_v12 = vmax.f32 %v961_v2, 0.0  ;;  %v1032_v14 = vmax.f32 %v959_v59, 0.0  ;;  %vm1210_vm5 = vcmp.lt.s32.totalorder %v1208_v8, 256 }
 0x17c   : > { %v818_v21 = vadd.f32 %v1713_v62, %v777_v17  ;;  %v951_v17 = vadd.f32 %v1826_v45, %v1788_v20 }
 0x17d   : > { %v973_v16 = vpop.f32.mrf.mxu2 }
 0x17e   : > { %v850_v25 = vmax.f32 %v818_v21, 0.0  ;;  %v974_v60 = vadd.f32 %v1826_v45, %v973_v16  ;;  %v1031_v16 = vmax.f32 %v956_v52, 0.0  ;;  %v1028_v21 = vmax.f32 %v949_v33, 0.0 }
 0x180   : > { %v634_v18 = vpop.f32.mrf.mxu0  ;;  %v1038_v0 = vmax.f32 %v974_v60, 0.0 }
 0x181   : > { %v778_v19 = vpop.f32.mrf.mxu1 }
 0x182   : > { %v779_v22 = vadd.f32 %v778_v19, %v634_v18  ;;  %v1029_v19 = vmax.f32 %v951_v17, 0.0 }
 0x184   : > { %v819_v23 = vadd.f32 %v1713_v62, %v779_v22 }
 0x185   : > { %v975_v24 = vpop.f32.mrf.mxu2 }
 0x186   : > { %v851_v27 = vmax.f32 %v819_v23, 0.0  ;;  %v976_v56 = vadd.f32 %v1826_v45, %v975_v24 }
 0x188   : > { %v868_v28 = vpack.c.bf16 %v851_v27, %v850_v25  ;;  %v637_v29 = vpop.f32.mrf.mxu0  ;;  %v1039_v61 = vmax.f32 %v976_v56, 0.0 }
 0x189   : > { %v781_v30 = vpop.f32.mrf.mxu1 }
 0x18a   : > { %1372 = vmatmul.msk.bf16.gmra.mxu2 %vm890_vm3, %v868_v28  ;;  %v782_v32 = vadd.f32 %v781_v30, %v637_v29 }
 0x18c   : > { %v820_v36 = vadd.f32 %v1713_v62, %v782_v32 }
 0x18d   : > { %v978_v31 = vpop.f32.mrf.mxu2 }
 0x18e   : > { %v852_v41 = vmax.f32 %v820_v36, 0.0  ;;  %v979_v54 = vadd.f32 %v1826_v45, %v978_v31 }
 0x190   : > { %v639_v34 = vpop.f32.mrf.mxu0  ;;  %v1040_v57 = vmax.f32 %v979_v54, 0.0 }
 0x191   : > { %v783_v35 = vpop.f32.mrf.mxu1 }
 0x192   : > { %v784_v37 = vadd.f32 %v783_v35, %v639_v34 }
 0x194   : > { %v821_v38 = vadd.f32 %v1713_v62, %v784_v37 }
 0x195   : > { %v980_v40 = vpop.f32.mrf.mxu2 }
 0x196   : > { %v853_v42 = vmax.f32 %v821_v38, 0.0  ;;  %v981_v62 = vadd.f32 %v1826_v45, %v980_v40 }
 0x198   : > { %v869_v43 = vpack.c.bf16 %v853_v42, %v852_v41  ;;  %v1041_v55 = vmax.f32 %v981_v62, 0.0 }
 0x19a   : > { %1373 = vmatmul.msk.bf16.gmra.mxu2 %vm890_vm3, %v869_v43 }
 0x19d   : > { %v983_v44 = vpop.f32.mrf.mxu2 }
 0x19e   : > { %v984_v49 = vadd.f32 %v1826_v45, %v983_v44  ;;  %v1060_v44 = vld [vmem:[%s1984_s7] sm:$0x1] }
 0x1a0   : > { %v1042_v51 = vmax.f32 %v984_v49, 0.0 }
 0x1a5   : > { %v985_v47 = vpop.f32.mrf.mxu2 }
 0x1a6   : > { %v986_v48 = vadd.f32 %v1826_v45, %v985_v47 }
 0x1a8   : > { %v1043_v50 = vmax.f32 %v986_v48, 0.0 }
 0x1aa   : > { %1374 = vmatpush.xpose.msk.msra.mxu3 %vm890_vm3, %v1043_v50 }
 0x1ad   : > { %v1832_v53 = vpop.f32.mrf.mxu2 }
 0x1ae   : > { %1375 = vmatpush.xpose.msk.msra.mxu3 %vm890_vm3, %v1042_v51  ;;  %v989_v5 = vadd.f32 %v1826_v45, %v1832_v53 }
 0x1b2   : > { %1376 = vmatpush.xpose.msk.msra.mxu3 %vm890_vm3, %v1041_v55 }
 0x1b5   : > { %v1838_v58 = vpop.f32.mrf.mxu2 }
 0x1b6   : > { %1377 = vmatpush.xpose.msk.msra.mxu3 %vm890_vm3, %v1040_v57  ;;  %v991_v3 = vadd.f32 %v1826_v45, %v1838_v58 }
 0x1ba   : > { %1378 = vmatpush.xpose.msk.msra.mxu3 %vm890_vm3, %v1039_v61 }
 0x1bd   : > { %v1844_v1 = vpop.f32.mrf.mxu2 }
 0x1be   : > { %1379 = vmatpush.xpose.msk.msra.mxu3 %vm890_vm3, %v1038_v0  ;;  %v994_v63 = vadd.f32 %v1826_v45, %v1844_v1 }
 0x1c2   : > { %1380 = vmatpush.xpose.msk.msra.mxu3 %vm890_vm3, %v1037_v4  ;;  %v1046_v4 = vmax.f32 %v994_v63, 0.0 }
 0x1c5   : > { %v1852_v7 = vpop.f32.mrf.mxu2 }
 0x1c6   : > { %1381 = vmatpush.xpose.msk.msra.mxu3 %vm890_vm3, %v1036_v6  ;;  %v996_v60 = vadd.f32 %v1826_v45, %v1852_v7  ;;  %v1045_v6 = vmax.f32 %v991_v3, 0.0  ;;  %v1044_v7 = vmax.f32 %v989_v5, 0.0 }
 0x1c8   : > { %v1047_v0 = vmax.f32 %v996_v60, 0.0 }
 0x1ca   : > { %1382 = vmatpush.xpose.msk.msra.mxu3 %vm890_vm3, %v1035_v9  ;;  %v1062_v9 = vstv %s1061_s15 }
 0x1cd   : > { %v1860_v11 = vpop.f32.mrf.mxu2 }
 0x1ce   : > { %1383 = vmatpush.xpose.msk.msra.mxu3 %vm890_vm3, %v1034_v10  ;;  %v999_v56 = vadd.f32 %v1826_v45, %v1860_v11 }
 0x1d0   : > { %v1048_v61 = vmax.f32 %v999_v56, 0.0 }
 0x1d2   : > { %1384 = vmatpush.xpose.msk.msra.mxu3 %vm890_vm3, %v1033_v12 }
 0x1d5   : > { %v1000_v15 = vpop.f32.mrf.mxu2 }
 0x1d6   : > { %1385 = vmatpush.xpose.msk.msra.mxu3 %vm890_vm3, %v1032_v14  ;;  %v1001_v54 = vadd.f32 %v1826_v45, %v1000_v15 }
 0x1d8   : > { %v1049_v57 = vmax.f32 %v1001_v54, 0.0 }
 0x1da   : > { %1386 = vmatpush.xpose.msk.msra.mxu3 %vm890_vm3, %v1031_v16 }
 0x1dd   : > { %v1003_v18 = vpop.f32.mrf.mxu2 }
 0x1de   : > { %1387 = vmatpush.xpose.msk.msra.mxu3 %vm890_vm3, %v1030_v39  ;;  %v1004_v62 = vadd.f32 %v1826_v45, %v1003_v18 }
 0x1e0   : > { %v1050_v55 = vmax.f32 %v1004_v62, 0.0 }
 0x1e2   : > { %1388 = vmatpush.xpose.msk.msra.mxu3 %vm890_vm3, %v1029_v19 }
 0x1e5   : > { %v1005_v22 = vpop.f32.mrf.mxu2 }
 0x1e6   : > { %1389 = vmatpush.xpose.msk.msra.mxu3 %vm890_vm3, %v1028_v21  ;;  %v1006_v49 = vadd.f32 %v1826_v45, %v1005_v22 }
 0x1e8   : > { %v1051_v51 = vmax.f32 %v1006_v49, 0.0 }
 0x1e9   : > { %1390 = vmatmul.msk.f32.vlgmr.msra.gmra.mxu3 %vm890_vm3, %v1060_v44 }
 0x1ed   : > { %v1008_v26 = vpop.f32.mrf.mxu2 }
 0x1ee   : > { %v1009_v47 = vadd.f32 %v1826_v45, %v1008_v26 }
 0x1f0   : > { %v1052_v50 = vmax.f32 %v1009_v47, 0.0 }
 0x1f5   : > { %v1010_v23 = vpop.f32.mrf.mxu2 }
 0x1f6   : > { %v1011_v42 = vadd.f32 %v1826_v45, %v1010_v23 }
 0x1f8   : > { %v1053_v48 = vmax.f32 %v1011_v42, 0.0 }
 0x1fd   : > { %v1013_v24 = vpop.f32.mrf.mxu2 }
 0x1fe   : > { %v1014_v40 = vadd.f32 %v1826_v45, %v1013_v24 }
 0x200   : > { %v1054_v43 = vmax.f32 %v1014_v40, 0.0 }
 0x205   : > { %v1015_v25 = vpop.f32.mrf.mxu2 }
 0x206   : > { %v1016_v37 = vadd.f32 %v1826_v45, %v1015_v25 }
 0x208   : > { %v1055_v41 = vmax.f32 %v1016_v37, 0.0 }
 0x20d   : > { %v1018_v27 = vpop.f32.mrf.mxu2 }
 0x20e   : > { %v1019_v35 = vadd.f32 %v1826_v45, %v1018_v27 }
 0x210   : > { %v1056_v38 = vmax.f32 %v1019_v35, 0.0 }
 0x215   : > { %v1020_v20 = vpop.f32.mrf.mxu2 }
 0x216   : > { %v1021_v32 = vadd.f32 %v1826_v45, %v1020_v20 }
 0x218   : > { %v1057_v36 = vmax.f32 %v1021_v32, 0.0 }
 0x21d   : > { %v1023_v28 = vpop.f32.mrf.mxu2 }
 0x21e   : > { %v1024_v31 = vadd.f32 %v1826_v45, %v1023_v28 }
 0x220   : > { %v1058_v34 = vmax.f32 %v1024_v31, 0.0 }
 0x225   : > { %v1025_v29 = vpop.f32.mrf.mxu2 }
 0x226   : > { %v1026_v30 = vadd.f32 %v1826_v45, %v1025_v29 }
 0x228   : > { %v1059_v13 = vmax.f32 %v1026_v30, 0.0 }
 0x22a   : > { %1391 = vmatpush.xpose.msk.msrb.mxu3 %vm890_vm3, %v1059_v13 }
 0x22e   : > { %1392 = vmatpush.xpose.msk.msrb.mxu3 %vm890_vm3, %v1058_v34 }
 0x232   : > { %1393 = vmatpush.xpose.msk.msrb.mxu3 %vm890_vm3, %v1057_v36 }
 0x236   : > { %1394 = vmatpush.xpose.msk.msrb.mxu3 %vm890_vm3, %v1056_v38 }
 0x23a   : > { %1395 = vmatpush.xpose.msk.msrb.mxu3 %vm890_vm3, %v1055_v41 }
 0x23e   : > { %1396 = vmatpush.xpose.msk.msrb.mxu3 %vm890_vm3, %v1054_v43 }
 0x242   : > { %1397 = vmatpush.xpose.msk.msrb.mxu3 %vm890_vm3, %v1053_v48 }
 0x246   : > { %1398 = vmatpush.xpose.msk.msrb.mxu3 %vm890_vm3, %v1052_v50 }
 0x24a   : > { %1399 = vmatpush.xpose.msk.msrb.mxu3 %vm890_vm3, %v1051_v51 }
 0x24e   : > { %1400 = vmatpush.xpose.msk.msrb.mxu3 %vm890_vm3, %v1050_v55 }
 0x252   : > { %1401 = vmatpush.xpose.msk.msrb.mxu3 %vm890_vm3, %v1049_v57 }
 0x256   : > { %1402 = vmatpush.xpose.msk.msrb.mxu3 %vm890_vm3, %v1048_v61 }
 0x25a   : > { %1403 = vmatpush.xpose.msk.msrb.mxu3 %vm890_vm3, %v1047_v0 }
 0x25e   : > { %1404 = vmatpush.xpose.msk.msrb.mxu3 %vm890_vm3, %v1046_v4 }
 0x262   : > { %1405 = vmatpush.xpose.msk.msrb.mxu3 %vm890_vm3, %v1045_v6 }
 0x266   : > { %1406 = vmatpush.xpose.msk.msrb.mxu3 %vm890_vm3, %v1044_v7 }
 0x269   : > { %1407 = vmatmul.msk.f32.vlgmr.msrb.gmra.mxu3 %vm890_vm3, %v1060_v44 }
 0x26c   : > { %v1179_v1 = vpop.f32.mrf.mxu3 }
 0x26d   : > { %v1180_v10 = vadd.f32 %v1179_v1, %v1062_v9 }
 0x2ec   : > { %v1199_v58 = vpop.f32.mrf.mxu3 }
 0x2ed   : > { %v1200_v2 = vadd.f32 %v1199_v58, %v1062_v9 }
 0x2ee   : > { %1220 = sbr.rel (!%p1623_p5) target bundleno = 795 (0x31b), region = 60 }
 0x2ef   : > { %v1204_v11 = vrot.slane %v1200_v2, 7 }
 0x2f1   : > { %v1206_v45 = vsel %vm1205_vm4, %v1180_v10, %v1204_v11 }
 0x2f2   : > { %1212 = vst.msk [vmem:[%s367_s18] sm:$0x3] %vm1210_vm5, %v1206_v45 }
 0x2f3   : > { %s1409_s23 = sshll.u32 %s1606_s8, 1 }
 0x2f4   : > { %s1222_s24 = ssub.s32 3, %s1409_s23 }
 0x2f5   : > { %p1223_p11 = scmp.lt.s32.totalorder %s1222_s24, 2 }
 0x2f7   : > { %s2001_s24 = smov (!%p1223_p11, %s1222_s24), 2 }
 0x2f8   : > { %s1225_s25 = ssub.s32 2, %s2001_s24 }
 0x2f9   : > { %s1226_s26 = sshll.u32 %s1225_s25, 4 }
 0x2fa   : > { %1227 = vsyncadd %s1922_s22, %s1226_s26  ;;  %p1410_p12 = scmp.ne.s32.totalorder %s2001_s24, 0  ;;  %s1229_s20 = scalar_lea.hbm %s1986_s9, %s1409_s23 }
 0x2fb   : > { %s1230_s29 = sshll.u32 %s2001_s24, 4  ;;  %s1936_s30 = sshll.u32 %s367_s18, 4  ;;  %s1988_s30 = int_to_ptr.vmem [resolvable:$true] %s1936_s30 }
 0x2fc   : > { %1991 = sst [smem:[#allocation6_spill]] %s1936_s30  ;;  %s1233_s8 = sshll.u32 %s1229_s20, 4  ;;  %s1234_s8 = int_to_ptr.hbm [resolvable:$true] %s1233_s8 }
 0x2fd   : > { %s1456_s10 = sshra.s32 %s1988_s30, 4  ;;  %s1458_s15 = sshrl.u32 %s1230_s29, 4  ;;  %s1457_s10 = int_to_ptr.vmem [resolvable:$true] %s1456_s10 }
 0x2fe   : > { %s1463_s17 = scalar_lea.vmem %s1457_s10, %s1458_s15  ;;  %s1531_s25 = smov [#allocation3]  }
 0x2ff   : > { %p1464_p13 = scmp.ne.s32.totalorder %s1457_s10, %s1463_s17  ;;  %s1467_s23 = scalar_lea.vmem %s1531_s25, 4 }
 0x300   : > { %p1469_p2 = scmp.lt.s32.totalorder %s1467_s23, %s1463_s17 }
 0x301   : > { %p1465_p0 = pnand %p1464_p13, %p1410_p12 }
 0x303   : > { %p1466_p1 = pneg %p1465_p0 }
 0x305   : > { %p1471_p3 = pnand %p1469_p2, %p1466_p1 }
 0x307   : > { %1474 = shalt.err (!%p1471_p3)
}
 0x308   : > { %s1475_s18 = sshra.s32 %s1234_s8, 4  ;;  %s1486_s20 = scalar_lea.hbm %s1986_s9, 3  ;;  %s1476_s18 = int_to_ptr.hbm [resolvable:$true] %s1475_s18 }
 0x309   : > { %s1482_s26 = scalar_lea.hbm %s1476_s18, %s1458_s15  ;;  %p1487_p8 = scmp.lt.s32.totalorder %s1476_s18, %s1986_s9 }
 0x30a   : > { %p1483_p4 = scmp.ne.s32.totalorder %s1476_s18, %s1482_s26  ;;  %p1488_p9 = scmp.lt.s32.totalorder %s1486_s20, %s1482_s26 }
 0x30c   : > { %p1484_p5 = pnand %p1483_p4, %p1410_p12  ;;  %p1489_p10 = por %p1488_p9, %p1487_p8 }
 0x30e   : > { %p1485_p7 = pneg %p1484_p5 }
 0x310   : > { %p1490_p11 = pnand %p1489_p10, %p1485_p7 }
 0x312   : > { %1493 = shalt.err (!%p1490_p11)
}
 0x313   : > { %s1992_s15 = sld [smem:[#allocation6_spill]] }
 0x319   : > { %s1993_s17 = int_to_ptr.vmem [resolvable:$true] %s1992_s15 }
 0x31a   : > { %1236 = dma.vmem_to_hbm [thread:$0]  (%p1410_p12), %s1993_s17, %s1230_s29, %s1234_s8, %s1922_s22  }
 0x31b PF: > { %p1421_p13 = scmp.ge.s32.totalorder %s1529_s14, 2  ;;  %s1245_s30 = sand.u32 1, %s1517_s11  }
 0x31c   : > { %s1246_s25 = scalar_lea.sflag [#allocation4], %s1245_s30 }
 0x31d   : > { %p1418_p0 = pnand %p1421_p13, %p1627_p6 }
 0x31f   : > { %p1419_p1 = pneg %p1418_p0 }
 0x321   : > { %1512 = dma.done.wait (%p1419_p1), %s1246_s25, 32  }
 0x322   : > { %1514 = vsyncadd (%p1419_p1), %s1246_s25, 4294967264  ;;  %p20_p2 = scmp.ge.s32.totalorder %s1610_s16, 4   ;;  %s1994_s11 = smov %s1521_s12 }
 0x323   : > { %s1995_s12 = smov %s1525_s13  ;;  %s1996_s13 = smov %s1621_s19 }
 0x324   : > { %s1997_s14 = smov %s1610_s16  ;;  %22 = sbr.rel (!%p20_p2) target bundleno = 5 (0x5), region = 94 }
 0x329   :  { %1252 = vsyncpa [#allocation4], 1 }
 0x32a   :  { %1254 = vsyncpa [#allocation4 + $0x1], 1 }

</bundles_post_ra>
